<compile_context>
chip_gen: v6e
topology: v6e:2x2x1
jax: 0.10.0
libtpu: 0.0.40
codegen_flags: <defaults>
</compile_context>

<pallas_src>
import math

import jax
import jax.numpy as jnp
import numpy as np
from jax.experimental import pallas as pl
from jax.experimental.pallas import tpu as pltpu

LN2 = math.log(2.0)
LANE = 128      # lane width (last dim)
SUBLANE = 8     # f32 sublane packing (second-to-last dim)


def schnet_mlp_kernel(x_ref, w1_ref, b1_ref, w2_ref, b2_ref, o_ref):
    # Hidden layer: h = shifted_softplus(x @ W1 + b1).
    # MXU inputs follow the weight dtype (bf16 when the wrapper pre-casts); accumulate f32.
    x = x_ref[...].astype(w1_ref.dtype)
    h = jnp.dot(x, w1_ref[...], preferred_element_type=jnp.float32)
    h = h + b1_ref[...]
    h = jax.nn.softplus(h) - LN2            # f32 elementwise (v5e has no bf16 VPU/EUP)
    # Output layer (no activation): o = h @ W2 + b2.
    o = jnp.dot(h.astype(w2_ref.dtype), w2_ref[...], preferred_element_type=jnp.float32)
    o_ref[...] = (o + b2_ref[...]).astype(o_ref.dtype)


def _round_up(x, m):
    return ((x + m - 1) // m) * m


def _pad2(a, rows, cols):
    pr, pc = rows - a.shape[0], cols - a.shape[1]
    if pr or pc:
        a = jnp.pad(a, ((0, pr), (0, pc)))
    return a


def _choose_tiling(n, tile_m):
    """Pick (tile, steps) for the batch axis.

    Tiny batches -> one block (pipelining buys nothing).  Otherwise pick an even step
    count (v7x megacore: both TCs get real work) and balance the tile so the trailing
    block has minimal raggedness; >=2 steps also enables DMA/compute overlap.
    """
    if n <= 256:
        return max(SUBLANE, _round_up(n, SUBLANE)), 1
    steps = pl.cdiv(n, tile_m)
    steps = max(2, _round_up(steps, 2))
    tile = _round_up(pl.cdiv(n, steps), SUBLANE)      # tile <= tile_m, balanced
    steps = pl.cdiv(n, tile)                          # never an all-padding trailing block
    return tile, steps


def _estimate_vmem_bytes(tile, n_in, n_hid_p, n_out, x_dt, w_dt, out_dt):
    bs = lambda d: np.dtype(d).itemsize
    # BlockSpec double-buffers every operand and the output.
    buffers = 2 * (tile * n_in * bs(x_dt)
                   + n_in * n_hid_p * bs(w_dt) + n_hid_p * 4
                   + n_hid_p * n_out * bs(w_dt) + n_out * 4
                   + tile * n_out * bs(out_dt))
    # Live in-kernel intermediates: bf16 x copy, f32 h + bf16 h copy, f32 o.
    work = tile * n_in * 2 + tile * n_hid_p * (4 + 2) + tile * n_out * 4
    return buffers + work


def schnet_mlp(x, w1, b1, w2, b2, *, tile_m=1024, use_bf16_mxu=True):
    """x: [N, n_in]; w1: [n_in, n_hidden]; b1: [1, n_hidden];
    w2: [n_hidden, n_out]; b2: [1, n_out] -> [N, n_out].

    Weights are stored as [in, out] (PyTorch weight.T); biases as [1, out].
    """
    n, n_in = x.shape
    n_hidden = w1.shape[1]
    n_out = w2.shape[1]

    # Pad only the (tiny, once-DMA'd) weights so the hidden dim is lane-dense.
    # Exact: padded W1 cols / b1 entries are 0, shifted_softplus(0) == 0, and the
    # matching W2 rows are 0.  n_in and n_out stay at their natural width.
    n_hid_p = _round_up(n_hidden, LANE)
    w_dtype = jnp.bfloat16 if use_bf16_mxu else x.dtype
    w1_p = _pad2(w1, n_in, n_hid_p).astype(w_dtype)
    b1_p = _pad2(b1, 1, n_hid_p).astype(jnp.float32)
    w2_p = _pad2(w2, n_hid_p, n_out).astype(w_dtype)
    b2_p = b2.astype(jnp.float32)

    tile, steps = _choose_tiling(n, tile_m)

    vmem_limit = _estimate_vmem_bytes(tile, n_in, n_hid_p, n_out,
                                      x.dtype, w_dtype, x.dtype)
    vmem_limit = min(48 * 1024 * 1024, max(2 * vmem_limit + (4 << 20), 16 << 20))

    out = pl.pallas_call(
        schnet_mlp_kernel,
        out_shape=jax.ShapeDtypeStruct((n, n_out), x.dtype),
        grid_spec=pltpu.PrefetchScalarGridSpec(
            num_scalar_prefetch=0,
            grid=(steps,),
            in_specs=[
                # Ragged last batch block is masked by Pallas; last dim = full array dim.
                pl.BlockSpec((tile, n_in), lambda i: (i, 0)),
                # Constant index maps -> weights/biases are DMA'd once and stay resident.
                pl.BlockSpec((n_in, n_hid_p), lambda i: (0, 0)),
                pl.BlockSpec((1, n_hid_p), lambda i: (0, 0)),
                pl.BlockSpec((n_hid_p, n_out), lambda i: (0, 0)),
                pl.BlockSpec((1, n_out), lambda i: (0, 0)),
            ],
            out_specs=pl.BlockSpec((tile, n_out), lambda i: (i, 0)),
        ),
        compiler_params=pltpu.CompilerParams(
            dimension_semantics=("parallel",),
            vmem_limit_bytes=vmem_limit,
        ),
    )(x, w1_p, b1_p, w2_p, b2_p)
    return out


def xavier_uniform(key, fan_in, fan_out, dtype=jnp.float32):
    # Matches torch.nn.init.xavier_uniform_ bound for a [fan_out, fan_in] weight,
    # stored directly as [in, out] (transpose of PyTorch's layout).
    bound = math.sqrt(6.0 / (fan_in + fan_out))
    return jax.random.uniform(key, (fan_in, fan_out), dtype, minval=-bound, maxval=bound)


def reference_mlp(x, w1, b1, w2, b2):
    h = x @ w1 + b1
    h = jax.nn.softplus(h) - LN2
    return h @ w2 + b2


if __name__ == "__main__":
    # Small shapes consistent with the module: n_in=32, n_hidden=32, n_out=16, batch=16.
    n_batch, n_in, n_hidden, n_out = 16, 32, 32, 16

    key = jax.random.PRNGKey(0)
    kx, kw1, kw2 = jax.random.split(key, 3)

    x = jax.random.normal(kx, (n_batch, n_in), jnp.float32)
    w1 = xavier_uniform(kw1, n_in, n_hidden)        # Dense(n_in, n_hidden, act=shifted_softplus)
    b1 = jnp.zeros((1, n_hidden), jnp.float32)      # zeros_initializer
    w2 = xavier_uniform(kw2, n_hidden, n_out)       # Dense(n_hidden, n_out)
    b2 = jnp.zeros((1, n_out), jnp.float32)

    ref = reference_mlp(x, w1, b1, w2, b2)

    # Structural check in full f32 (tight tolerance).
    out_f32 = jax.block_until_ready(schnet_mlp(x, w1, b1, w2, b2, use_bf16_mxu=False))
    np.testing.assert_allclose(np.asarray(out_f32), np.asarray(ref), rtol=1e-5, atol=1e-5)

    # Default perf path: bf16 MXU inputs, f32 accumulation (looser tolerance by design).
    out = jax.block_until_ready(schnet_mlp(x, w1, b1, w2, b2))
    np.testing.assert_allclose(np.asarray(out), np.asarray(ref), rtol=2e-2, atol=2e-2)

    print("KERNEL_OK")
</pallas_src>

<mosaic_0001>
module attributes {stable_mosaic.version = 11 : i64} {
  func.func @schnet_mlp_kernel(%arg0: i32, %arg1: memref<16x32xf32, #tpu.memory_space<vmem>>, %arg2: memref<32x128xf32, #tpu.memory_space<vmem>>, %arg3: memref<1x128xf32, #tpu.memory_space<vmem>>, %arg4: memref<128x16xf32, #tpu.memory_space<vmem>>, %arg5: memref<1x16xf32, #tpu.memory_space<vmem>>, %arg6: memref<16x16xf32, #tpu.memory_space<vmem>>) attributes {dimension_semantics = [#tpu.dimension_semantics<parallel>], iteration_bounds = array<i64: 1>, scalar_prefetch = 0 : i64, scratch_operands = 0 : i64, tpu.core_type = #tpu.core_type<tc>, window_params = [{transform_indices = @transform_0, window_bounds = array<i64: 16, 32>}, {pipeline_mode = #tpu.pipeline_mode<synchronous>, transform_indices = @transform_1, window_bounds = array<i64: 32, 128>}, {pipeline_mode = #tpu.pipeline_mode<synchronous>, transform_indices = @transform_2, window_bounds = array<i64: 1, 128>}, {pipeline_mode = #tpu.pipeline_mode<synchronous>, transform_indices = @transform_3, window_bounds = array<i64: 128, 16>}, {pipeline_mode = #tpu.pipeline_mode<synchronous>, transform_indices = @transform_4, window_bounds = array<i64: 1, 16>}, {transform_indices = @transform_5, window_bounds = array<i64: 16, 16>}]} {
    %c0 = arith.constant 0 : index
    %c0_0 = arith.constant 0 : index
    %0 = vector.load %arg1[%c0, %c0_0] : memref<16x32xf32, #tpu.memory_space<vmem>>, vector<16x32xf32>
    %c0_1 = arith.constant 0 : index
    %c0_2 = arith.constant 0 : index
    %1 = vector.load %arg2[%c0_1, %c0_2] : memref<32x128xf32, #tpu.memory_space<vmem>>, vector<32x128xf32>
    %cst = arith.constant dense<0.000000e+00> : vector<16x128xf32>
    %2 = tpu.matmul %0, %1, %cst {dimension_numbers = #tpu.dot_dimension_numbers<[1], [0], [0], [1], [0, 0, 1, 1], [], []>} : vector<16x32xf32>, vector<32x128xf32>, vector<16x128xf32> -> vector<16x128xf32>
    %c0_3 = arith.constant 0 : index
    %c0_4 = arith.constant 0 : index
    %3 = vector.load %arg3[%c0_3, %c0_4] : memref<1x128xf32, #tpu.memory_space<vmem>>, vector<1x128xf32>
    %4 = vector.broadcast %3 : vector<1x128xf32> to vector<16x128xf32>
    %5 = arith.addf %2, %4 : vector<16x128xf32>
    %cst_5 = arith.constant 0.000000e+00 : f32
    %6 = vector.broadcast %cst_5 : f32 to vector<16x128xf32>
    %7 = arith.maximumf %5, %6 : vector<16x128xf32>
    %8 = vector.broadcast %cst_5 : f32 to vector<16x128xf32>
    %9 = arith.subf %5, %8 : vector<16x128xf32>
    %10 = arith.cmpf one, %9, %9 : vector<16x128xf32>
    %11 = vector.broadcast %cst_5 : f32 to vector<16x128xf32>
    %12 = arith.addf %5, %11 : vector<16x128xf32>
    %13 = math.absf %9 : vector<16x128xf32>
    %cst_6 = arith.constant 0.000000e+00 : f32
    %14 = vector.broadcast %cst_6 : f32 to vector<16x128xf32>
    %15 = arith.subf %14, %13 : vector<16x128xf32>
    %16 = math.exp %15 : vector<16x128xf32>
    %17 = math.log1p %16 : vector<16x128xf32>
    %18 = arith.addf %7, %17 : vector<16x128xf32>
    %19 = arith.select %10, %12, %18 : vector<16x128xi1>, vector<16x128xf32>
    %cst_7 = arith.constant 0.693147182 : f32
    %20 = vector.broadcast %cst_7 : f32 to vector<16x128xf32>
    %21 = arith.subf %19, %20 : vector<16x128xf32>
    %c0_8 = arith.constant 0 : index
    %c0_9 = arith.constant 0 : index
    %22 = vector.load %arg4[%c0_8, %c0_9] : memref<128x16xf32, #tpu.memory_space<vmem>>, vector<128x16xf32>
    %cst_10 = arith.constant dense<0.000000e+00> : vector<16x16xf32>
    %23 = tpu.matmul %21, %22, %cst_10 {dimension_numbers = #tpu.dot_dimension_numbers<[1], [0], [0], [1], [0, 0, 1, 1], [], []>} : vector<16x128xf32>, vector<128x16xf32>, vector<16x16xf32> -> vector<16x16xf32>
    %c0_11 = arith.constant 0 : index
    %c0_12 = arith.constant 0 : index
    %24 = vector.load %arg5[%c0_11, %c0_12] : memref<1x16xf32, #tpu.memory_space<vmem>>, vector<1x16xf32>
    %25 = vector.broadcast %24 : vector<1x16xf32> to vector<16x16xf32>
    %26 = arith.addf %23, %25 : vector<16x16xf32>
    %c0_13 = arith.constant 0 : index
    %c0_14 = arith.constant 0 : index
    %27 = vector.load %arg6[%c0_13, %c0_14] : memref<16x16xf32, #tpu.memory_space<vmem>>, vector<16x16xf32>
    tpu.vector_store %arg6[%c0_13, %c0_14], %26 {strides = array<i32>} : memref<16x16xf32, #tpu.memory_space<vmem>>, vector<16x16xf32>,
    return
  }
  func.func @transform_0(%arg0: i32) -> (i32, i32) {
    %c0_i32 = arith.constant 0 : i32
    %c0_i32_0 = arith.constant 0 : i32
    return %arg0, %c0_i32 : i32, i32
  }
  func.func @transform_1(%arg0: i32) -> (i32, i32) {
    %c0_i32 = arith.constant 0 : i32
    %c0_i32_0 = arith.constant 0 : i32
    %c0_i32_1 = arith.constant 0 : i32
    return %c0_i32, %c0_i32_0 : i32, i32
  }
  func.func @transform_2(%arg0: i32) -> (i32, i32) {
    %c0_i32 = arith.constant 0 : i32
    %c0_i32_0 = arith.constant 0 : i32
    %c0_i32_1 = arith.constant 0 : i32
    return %c0_i32, %c0_i32_0 : i32, i32
  }
  func.func @transform_3(%arg0: i32) -> (i32, i32) {
    %c0_i32 = arith.constant 0 : i32
    %c0_i32_0 = arith.constant 0 : i32
    %c0_i32_1 = arith.constant 0 : i32
    return %c0_i32, %c0_i32_0 : i32, i32
  }
  func.func @transform_4(%arg0: i32) -> (i32, i32) {
    %c0_i32 = arith.constant 0 : i32
    %c0_i32_0 = arith.constant 0 : i32
    %c0_i32_1 = arith.constant 0 : i32
    return %c0_i32, %c0_i32_0 : i32, i32
  }
  func.func @transform_5(%arg0: i32) -> (i32, i32) {
    %c0_i32 = arith.constant 0 : i32
    %c0_i32_0 = arith.constant 0 : i32
    return %arg0, %c0_i32 : i32, i32
  }
}

</mosaic_0001>

<bundles_post_ra>
// kernel: tpu_custom_call.1
= control target key start
LH: loop header
LB: loop body
LE: loop exit
PB: predicated region body
PF: predicated region fallthrough
CT: control target
= control target key end

     0   :  { %vm34_vm0 = vcmask 261120   ;;  %s488_s0 = inlined_call_operand.vmem [shape: f32[16,32], index: 0, kind: input, shape index: {}]   ;;  %s489_s1 = inlined_call_operand.vmem [shape: f32[32,128], index: 1, kind: input, shape index: {}]   ;;  %s490_s2 = inlined_call_operand.vmem [shape: f32[1,128], index: 2, kind: input, shape index: {}]   ;;  %s491_s3 = inlined_call_operand.vmem [shape: f32[128,16], index: 3, kind: input, shape index: {}]   ;;  %s492_s4 = inlined_call_operand.vmem [shape: f32[1,16], index: 4, kind: input, shape index: {}]   ;;  %s493_s5 = inlined_call_operand.hbm [shape: f32[16,16], index: 5, kind: output, shape index: {}]  }
   0x1   :  { %v26_v0 = vld [vmem:[%s489_s1 + $0x18] sm:$0xff]  ;;  %v25_v1 = vld [vmem:[%s489_s1 + $0x10] sm:$0xff]  ;;  %v21_v2 = vld [vmem:[%s488_s0] sm:$0xff] }
   0x2   :  { %301 = vmatprep.subr.mxu0 %v26_v0  ;;  %v24_v3 = vld [vmem:[%s489_s1 + $0x8] sm:$0xff]  ;;  %309 = vmatprep.mubr.msk.f32.mxu0 %vm34_vm0, %v21_v2 }
   0x3   :  { %302 = vmatpush3.msra.mxu0 %v26_v0 }
   0x4   :  { %10 = vsyncpa [#allocation3], 0  ;;  %303 = vmatprep.subr.mxu0 %v25_v1  ;;  %v23_v4 = vld [vmem:[%s489_s1] sm:$0xff]  ;;  %v22_v5 = vld [vmem:[%s488_s0 + $0x8] sm:$0xff]  ;;  %vm252_vm5 = vcmask 130048   ;;  %s380_s10 = smov [#allocation2]  }
   0x5   :  { %304 = vmatpush3.msra.mxu0 %v25_v1  ;;  %v169_v6 = vld [vmem:[%s491_s3 + $0x78] sm:$0xff]  ;;  %v168_v7 = vld [vmem:[%s491_s3 + $0x70] sm:$0xff]  ;;  %v167_v8 = vld [vmem:[%s491_s3 + $0x68] sm:$0xff]  ;;  %s260_s11 = sshll.u32 %s380_s10, 4  ;;  %s261_s11 = int_to_ptr.vmem [resolvable:$true] %s260_s11 }
   0x6   :  { %305 = vmatprep.subr.mxu0 %v24_v3  ;;  %312 = vmatprep.subr.mxu1 %v169_v6  ;;  %v166_v9 = vld [vmem:[%s491_s3 + $0x60] sm:$0xff]  ;;  %v165_v10 = vld [vmem:[%s491_s3 + $0x58] sm:$0xff]  ;;  %v164_v11 = vld [vmem:[%s491_s3 + $0x50] sm:$0xff]  ;;  %s358_s12 = scalar_lea.vmem %s261_s11, 256  ;;  %p363_p1 = scmp.lt.s32.totalorder %s261_s11, %s261_s11 }
   0x7   :  { %306 = vmatpush3.msra.mxu0 %v24_v3  ;;  %313 = vmatpush3.msra.mxu1 %v169_v6  ;;  %v163_v12 = vld [vmem:[%s491_s3 + $0x48] sm:$0xff]  ;;  %v162_v13 = vld [vmem:[%s491_s3 + $0x40] sm:$0xff]  ;;  %v161_v14 = vld [vmem:[%s491_s3 + $0x38] sm:$0xff]  ;;  %p359_p0 = scmp.ne.s32.totalorder %s261_s11, %s358_s12  ;;  %p364_p2 = scmp.lt.s32.totalorder %s358_s12, %s358_s12 }
   0x8   :  { %307 = vmatprep.subr.mxu0 %v23_v4  ;;  %314 = vmatprep.subr.mxu1 %v168_v7  ;;  %v160_v15 = vld [vmem:[%s491_s3 + $0x30] sm:$0xff]  ;;  %v159_v16 = vld [vmem:[%s491_s3 + $0x28] sm:$0xff]  ;;  %v158_v17 = vld [vmem:[%s491_s3 + $0x20] sm:$0xff] }
   0x9   :  { %308 = vmatpush3.msra.mxu0 %v23_v4  ;;  %315 = vmatpush3.msra.mxu1 %v168_v7  ;;  %v157_v18 = vld [vmem:[%s491_s3 + $0x18] sm:$0xff]  ;;  %v156_v19 = vld [vmem:[%s491_s3 + $0x10] sm:$0xff]  ;;  %v155_v20 = vld [vmem:[%s491_s3 + $0x8] sm:$0xff]  ;;  %p365_p3 = por %p364_p2, %p363_p1 }
   0xa   :  { %310 = vmatmul.mubr.msk.f32.vlgmr.msra.gmra.mxu0 %vm34_vm0, %v22_v5  ;;  %316 = vmatprep.subr.mxu1 %v167_v8  ;;  %v154_v21 = vld [vmem:[%s491_s3] sm:$0xff] }
   0xb   :  { %317 = vmatpush3.msra.mxu1 %v167_v8  ;;  %v271_v22 = vld [vmem:[%s490_s2] ss:$0 sm:$0xff]  ;;  %p366_p4 = pnand %p365_p3, %p359_p0 }
   0xc   :  { %318 = vmatprep.subr.mxu1 %v166_v9  ;;  %v276_v59 = vld [vmem:[%s492_s4] ss:$0 sm:$0xff] }
   0xd   :  { %319 = vmatpush3.msra.mxu1 %v166_v9 }
   0xe   :  { %320 = vmatprep.subr.mxu1 %v165_v10 }
   0xf   :  { %321 = vmatpush3.msra.mxu1 %v165_v10 }
  0x10   :  { %322 = vmatprep.subr.mxu1 %v164_v11 }
  0x11   :  { %323 = vmatpush3.msra.mxu1 %v164_v11 }
  0x12   :  { %324 = vmatprep.subr.mxu1 %v163_v12 }
  0x13   :  { %325 = vmatpush3.msra.mxu1 %v163_v12 }
  0x14   :  { %326 = vmatprep.subr.mxu1 %v162_v13 }
  0x15   :  { %327 = vmatpush3.msra.mxu1 %v162_v13 }
  0x16   :  { %328 = vmatprep.subr.mxu1 %v161_v14 }
  0x17   :  { %329 = vmatpush3.msra.mxu1 %v161_v14 }
  0x18   :  { %330 = vmatprep.subr.mxu1 %v160_v15 }
  0x19   :  { %331 = vmatpush3.msra.mxu1 %v160_v15 }
  0x1a   :  { %332 = vmatprep.subr.mxu1 %v159_v16 }
  0x1b   :  { %333 = vmatpush3.msra.mxu1 %v159_v16 }
  0x1c   :  { %334 = vmatprep.subr.mxu1 %v158_v17 }
  0x1d   :  { %335 = vmatpush3.msra.mxu1 %v158_v17 }
  0x1e   :  { %336 = vmatprep.subr.mxu1 %v157_v18 }
  0x1f   :  { %337 = vmatpush3.msra.mxu1 %v157_v18 }
  0x20   :  { %338 = vmatprep.subr.mxu1 %v156_v19 }
  0x21   :  { %339 = vmatpush3.msra.mxu1 %v156_v19 }
  0x22   :  { %340 = vmatprep.subr.mxu1 %v155_v20 }
  0x23   :  { %341 = vmatpush3.msra.mxu1 %v155_v20 }
  0x24   :  { %342 = vmatprep.subr.mxu1 %v154_v21 }
  0x25   :  { %343 = vmatpush3.msra.mxu1 %v154_v21 }
  0xca   :  { %v311_v23 = vpop.f32.mrf.mxu0 }
  0xcb   :  { %v113_v24 = vadd.f32 %v311_v23, %v271_v22 }
  0xcc   :  { %v107_v25 = vpop.f32.mrf.mxu0 }
  0xcd   :  { %v123_v26 = vand.u32 2147483647, %v113_v24  ;;  %v108_v27 = vadd.f32 %v271_v22, %v107_v25  ;;  %v117_v47 = vmax.f32 %v113_v24, 0.0  ;;  %vm119_vm3 = vcmp.ne.f32.partialorder %v113_v24, %v113_v24 }
  0xcf   :  { %v125_v28 = vsub.f32 0.0, %v123_v26  ;;  %v122_v29 = vand.u32 2147483647, %v108_v27  ;;  %v116_v51 = vmax.f32 %v108_v27, 0.0  ;;  %vm118_vm4 = vcmp.ne.f32.partialorder %v108_v27, %v108_v27 }
  0xd1   :  { %v128_v30 = vmul.f32 1.442695, %v125_v28  ;;  %v124_v31 = vsub.f32 0.0, %v122_v29 }
  0xd3   :  { %350 = vpow2.f32 %v128_v30  ;;  %v126_v32 = vmul.f32 1.442695, %v124_v31 }
  0xd5   :  { %352 = vpow2.f32 %v126_v32 }
  0xe0   :  { %v351_v33 = vpop.eup %350 }
  0xe1   :  { %v139_v34 = vadd.f32 1.0, %v351_v33  ;;  %v142_v37 = vmul.f32 -0.5, %v351_v33  ;;  %v145_v40 = vand.u32 2147483647, %v351_v33 }
  0xe2   :  { %v353_v35 = vpop.eup %352 }
  0xe3   :  { %v130_v36 = vadd.f32 1.0, %v353_v35  ;;  %354 = vlog2.f32 %v139_v34  ;;  %v133_v38 = vmul.f32 -0.5, %v353_v35  ;;  %v143_v39 = vadd.f32 1.0, %v142_v37 }
  0xe4   :  { %v136_v43 = vand.u32 2147483647, %v353_v35  ;;  %vm146_vm1 = vcmp.lt.f32.partialorder %v145_v40, 0.0004427343 }
  0xe5   :  { %356 = vlog2.f32 %v130_v36  ;;  %v134_v41 = vadd.f32 1.0, %v133_v38  ;;  %v144_v45 = vmul.f32 %v351_v33, %v143_v39 }
  0xe6   :  { %vm137_vm2 = vcmp.lt.f32.partialorder %v136_v43, 0.0004427343 }
  0xe7   :  { %v135_v49 = vmul.f32 %v353_v35, %v134_v41 }
  0xf0   :  { %v355_v42 = vpop.eup %354 }
  0xf1   :  { %v141_v44 = vmul.f32 0.6931472, %v355_v42 }
  0xf2   :  { %v357_v46 = vpop.eup %356 }
  0xf3   :  { %v132_v48 = vmul.f32 0.6931472, %v357_v46  ;;  %v147_v50 = vsel %vm146_vm1, %v144_v45, %v141_v44 }
  0xf4   :  { %v149_v52 = vadd.f32 %v147_v50, %v117_v47 }
  0xf5   :  { %v138_v53 = vsel %vm137_vm2, %v135_v49, %v132_v48 }
  0xf6   :  { %v148_v54 = vadd.f32 %v138_v53, %v116_v51  ;;  %v151_v55 = vsel %vm119_vm3, %v113_v24, %v149_v52 }
  0xf7   :  { %v275_v58 = vadd.f32 -0.6931472, %v151_v55 }
  0xf8   :  { %v150_v56 = vsel %vm118_vm4, %v108_v27, %v148_v54 }
  0xf9   :  { %v274_v57 = vadd.f32 -0.6931472, %v150_v56 }
  0xfb   :  { %344 = vmatprep.mubr.f32.mxu1 %v274_v57 }
  0xfc   :  { %345 = vmatmul.mubr.f32.vlgmr.msra.gmra.mxu1 %v275_v58 }
 0x1bc   :  { %v346_v60 = vpop.f32.mrf.mxu1 }
 0x1bd   :  { %v249_v61 = vadd.f32 %v346_v60, %v276_v59 }
 0x1be   :  { %v243_v62 = vpop.f32.mrf.mxu1 }
 0x1bf   :  { %254 = vst.msk [vmem:[#allocation2 + $0x8] sm:$0xff] %vm252_vm5, %v249_v61  ;;  %v244_v63 = vadd.f32 %v276_v59, %v243_v62 }
 0x1c1   :  { %253 = vst.msk [vmem:[#allocation2] sm:$0xff] %vm252_vm5, %v244_v63 }
 0x1c2   :  { %369 = shalt.err (!%p366_p4)
}
 0x1c3   :  { %s381_s13 = smov 128   ;;  %s382_s14 = smov 8  }
 0x1c4   :  { %266 = dma.vmem_to_hbm [thread:$0]  %s261_s11, 256, %s493_s5, [#allocation3], %s381_s13, %s381_s13, %s382_s14  }
 0x1c5   :  { %378 = dma.done.wait [#allocation3], 256  }
 0x1c6   :  { %379 = vsyncadd [#allocation3], 4294967040 }
 0x1c7   :  { %270 = vsyncpa [#allocation3], 1 }

</bundles_post_ra>
